<compile_context>
chip_gen: v7x
topology: tpu7x:2x2x1
jax: 0.10.0
libtpu: 0.0.40
codegen_flags: <defaults>
</compile_context>

<pallas_src>
import functools

import jax
import jax.numpy as jnp
from jax.experimental import pallas as pl
from jax.experimental.pallas import tpu as pltpu

LANE = 128


def _round_up(n, m):
    return ((n + m - 1) // m) * m


def _choose_tm(batch):
    """Batch-tile size: prefer the largest tile (<=1024) that still gives
    >=2 grid steps (v7x megacore) and wastes <25% of rows on tail padding.
    Tiles are multiples of 16 sublanes (bf16-friendly); tiny batches fall back
    to a single full-array tile."""
    b8 = _round_up(max(batch, 8), 8)
    for tm in (1024, 512, 256, 128, 64, 32, 16):
        if tm >= b8:                      # would collapse to a single grid step
            continue
        waste = _round_up(b8, tm) - b8
        if 4 * waste <= b8:               # <25% padded rows in the last tile
            return tm
    return b8                             # tiny batch: one full-array tile


def _sigmoid(h):
    # sigmoid(x) == 0.5 * tanh(x/2) + 0.5 : one EUP tanh + two cheap VPU ops
    # instead of exp + exact divide. Stays f32 (safe on v5e).
    return 0.5 * jnp.tanh(0.5 * h) + 0.5


def _mlp_kernel(x_ref,
                w1_ref, b1_ref,
                w2_ref, b2_ref,
                w3_ref, b3_ref,
                w4_ref, b4_ref,
                o_ref):
    # Four MXU matmuls (bf16 operands, f32 accumulate) + three EUP sigmoids,
    # fully fused on one (TM, *) batch tile. Weights are resident in VMEM.
    h = jnp.dot(x_ref[...], w1_ref[...],
                preferred_element_type=jnp.float32) + b1_ref[...]
    h = _sigmoid(h)

    h = jnp.dot(h.astype(jnp.bfloat16), w2_ref[...],
                preferred_element_type=jnp.float32) + b2_ref[...]
    h = _sigmoid(h)

    h = jnp.dot(h.astype(jnp.bfloat16), w3_ref[...],
                preferred_element_type=jnp.float32) + b3_ref[...]
    h = _sigmoid(h)

    out = jnp.dot(h.astype(jnp.bfloat16), w4_ref[...],
                  preferred_element_type=jnp.float32) + b4_ref[...]
    o_ref[...] = out.astype(o_ref.dtype)


@functools.partial(jax.jit, static_argnames=("num_classes",))
def simple_mlp_forward(x, params, *, num_classes):
    """x: (batch, input_dim) f32. params hold lane-padded bf16 weights (in,out)
    and f32 (1,out) biases. Returns (batch, num_classes) f32 logits."""
    w1, b1 = params["w1"], params["b1"]
    w2, b2 = params["w2"], params["b2"]
    w3, b3 = params["w3"], params["b3"]
    w4, b4 = params["w4"], params["b4"]

    batch, input_dim = x.shape
    din_pad = w1.shape[0]
    h1, h2, h3 = w1.shape[1], w2.shape[1], w3.shape[1]
    c_pad = w4.shape[1]

    tm = _choose_tm(batch)
    b_pad = _round_up(batch, tm)
    grid = (b_pad // tm,)

    # Stream activations as bf16 (the kernel feeds them straight to the MXU);
    # skip the pad pass entirely in the aligned common case.
    x_bf = x.astype(jnp.bfloat16)
    if b_pad != batch or din_pad != input_dim:
        x_bf = jnp.pad(x_bf, ((0, b_pad - batch), (0, din_pad - input_dim)))

    def _resident(shape):  # full-array block, constant index -> stays in VMEM
        return pl.BlockSpec(shape, lambda i: (0, 0))

    flops = 2 * b_pad * (din_pad * h1 + h1 * h2 + h2 * h3 + h3 * c_pad)
    transc = b_pad * (h1 + h2 + h3)
    param_bytes = sum(int(p.size) * p.dtype.itemsize
                      for p in (w1, b1, w2, b2, w3, b3, w4, b4))
    io_bytes = b_pad * (din_pad * 2 + c_pad * 4)   # bf16 in, f32 out

    out = pl.pallas_call(
        _mlp_kernel,
        out_shape=jax.ShapeDtypeStruct((b_pad, c_pad), jnp.float32),
        grid=grid,
        in_specs=[
            pl.BlockSpec((tm, din_pad), lambda i: (i, 0)),
            _resident(w1.shape), _resident(b1.shape),
            _resident(w2.shape), _resident(b2.shape),
            _resident(w3.shape), _resident(b3.shape),
            _resident(w4.shape), _resident(b4.shape),
        ],
        out_specs=pl.BlockSpec((tm, c_pad), lambda i: (i, 0)),
        compiler_params=pltpu.CompilerParams(
            dimension_semantics=("parallel",)),
        cost_estimate=pl.CostEstimate(
            flops=int(flops),
            transcendentals=int(transc),
            bytes_accessed=int(param_bytes + io_bytes)),
    )(x_bf, w1, b1, w2, b2, w3, b3, w4, b4)

    return out[:batch, :num_classes]


def init_params(key, input_dim, num_classes):
    """PyTorch-style init U(-1/sqrt(fan_in), 1/sqrt(fan_in)), zero-padded to
    lane multiples, weights stored bf16 as (in, out), biases f32 (1, out)."""
    dims = [(input_dim, 500), (500, 500), (500, 100), (100, num_classes)]
    din_pad = _round_up(input_dim, LANE)
    out_pads = [_round_up(o, LANE) for _, o in dims]
    in_pads = [din_pad] + out_pads[:-1]

    params = {}
    for idx, ((fan_in, fan_out), ip, op) in enumerate(
            zip(dims, in_pads, out_pads), start=1):
        key, kw, kb = jax.random.split(key, 3)
        bound = 1.0 / jnp.sqrt(jnp.float32(fan_in))
        w = jax.random.uniform(kw, (fan_in, fan_out), jnp.float32,
                               minval=-bound, maxval=bound)
        b = jax.random.uniform(kb, (fan_out,), jnp.float32,
                               minval=-bound, maxval=bound)
        # Zero padding: extra COLUMNS of this W and extra ROWS of the next W
        # are zero, so sigmoid(0)=0.5 in padded lanes never leaks forward.
        w_p = jnp.zeros((ip, op), jnp.float32).at[:fan_in, :fan_out].set(w)
        b_p = jnp.zeros((1, op), jnp.float32).at[0, :fan_out].set(b)
        params[f"w{idx}"] = w_p.astype(jnp.bfloat16)
        params[f"b{idx}"] = b_p
    return params


def reference_forward(x, params, num_classes):
    """Pure-JAX reference mimicking the kernel's bf16-operand / f32-accumulate
    math (bf16 weight rounding is shared, so this checks the kernel, not the
    f32 PyTorch model; bf16 weights add ~3e-3 relative weight error)."""
    din_pad = params["w1"].shape[0]
    h = jnp.zeros((x.shape[0], din_pad), jnp.float32).at[:, :x.shape[1]].set(x)
    h = h.astype(jnp.bfloat16)
    for i in (1, 2, 3):
        h = jnp.dot(h, params[f"w{i}"],
                    preferred_element_type=jnp.float32) + params[f"b{i}"]
        h = jax.nn.sigmoid(h).astype(jnp.bfloat16)
    out = jnp.dot(h, params["w4"],
                  preferred_element_type=jnp.float32) + params["b4"]
    return out[:, :num_classes]


if __name__ == "__main__":
    batch, input_dim, num_classes = 8, 64, 10

    key = jax.random.PRNGKey(0)
    key, kx = jax.random.split(key)
    x = jax.random.normal(kx, (batch, input_dim), jnp.float32)
    params = init_params(key, input_dim, num_classes)

    out = simple_mlp_forward(x, params, num_classes=num_classes)
    out = jax.block_until_ready(out)

    ref = reference_forward(x, params, num_classes)
    assert out.shape == (batch, num_classes)
    assert jnp.allclose(out, ref, atol=2e-3, rtol=2e-3), \
        "mismatch vs pure-JAX reference"

    print("KERNEL_OK")
</pallas_src>

<mosaic_0001>
module attributes {stable_mosaic.version = 11 : i64} {
  func.func @_mlp_kernel(%arg0: i32, %arg1: memref<8x128xbf16, #tpu.memory_space<vmem>>, %arg2: memref<128x512xbf16, #tpu.memory_space<vmem>>, %arg3: memref<1x512xf32, #tpu.memory_space<vmem>>, %arg4: memref<512x512xbf16, #tpu.memory_space<vmem>>, %arg5: memref<1x512xf32, #tpu.memory_space<vmem>>, %arg6: memref<512x128xbf16, #tpu.memory_space<vmem>>, %arg7: memref<1x128xf32, #tpu.memory_space<vmem>>, %arg8: memref<128x128xbf16, #tpu.memory_space<vmem>>, %arg9: memref<1x128xf32, #tpu.memory_space<vmem>>, %arg10: memref<8x128xf32, #tpu.memory_space<vmem>>) attributes {dimension_semantics = [#tpu.dimension_semantics<parallel>], iteration_bounds = array<i64: 1>, scalar_prefetch = 0 : i64, scratch_operands = 0 : i64, tpu.core_type = #tpu.core_type<tc>, window_params = [{transform_indices = @transform_0, window_bounds = array<i64: 8, 128>}, {pipeline_mode = #tpu.pipeline_mode<synchronous>, transform_indices = @transform_1, window_bounds = array<i64: 128, 512>}, {pipeline_mode = #tpu.pipeline_mode<synchronous>, transform_indices = @transform_2, window_bounds = array<i64: 1, 512>}, {pipeline_mode = #tpu.pipeline_mode<synchronous>, transform_indices = @transform_3, window_bounds = array<i64: 512, 512>}, {pipeline_mode = #tpu.pipeline_mode<synchronous>, transform_indices = @transform_4, window_bounds = array<i64: 1, 512>}, {pipeline_mode = #tpu.pipeline_mode<synchronous>, transform_indices = @transform_5, window_bounds = array<i64: 512, 128>}, {pipeline_mode = #tpu.pipeline_mode<synchronous>, transform_indices = @transform_6, window_bounds = array<i64: 1, 128>}, {pipeline_mode = #tpu.pipeline_mode<synchronous>, transform_indices = @transform_7, window_bounds = array<i64: 128, 128>}, {pipeline_mode = #tpu.pipeline_mode<synchronous>, transform_indices = @transform_8, window_bounds = array<i64: 1, 128>}, {transform_indices = @transform_9, window_bounds = array<i64: 8, 128>}]} {
    %c0 = arith.constant 0 : index
    %c0_0 = arith.constant 0 : index
    %0 = vector.load %arg1[%c0, %c0_0] : memref<8x128xbf16, #tpu.memory_space<vmem>>, vector<8x128xbf16>
    %c0_1 = arith.constant 0 : index
    %c0_2 = arith.constant 0 : index
    %1 = vector.load %arg2[%c0_1, %c0_2] : memref<128x512xbf16, #tpu.memory_space<vmem>>, vector<128x512xbf16>
    %cst = arith.constant dense<0.000000e+00> : vector<8x512xf32>
    %2 = tpu.matmul %0, %1, %cst {dimension_numbers = #tpu.dot_dimension_numbers<[1], [0], [0], [1], [0, 0, 1, 1], [], []>} : vector<8x128xbf16>, vector<128x512xbf16>, vector<8x512xf32> -> vector<8x512xf32>
    %c0_3 = arith.constant 0 : index
    %c0_4 = arith.constant 0 : index
    %3 = vector.load %arg3[%c0_3, %c0_4] : memref<1x512xf32, #tpu.memory_space<vmem>>, vector<1x512xf32>
    %4 = vector.broadcast %3 : vector<1x512xf32> to vector<8x512xf32>
    %5 = arith.addf %2, %4 : vector<8x512xf32>
    %cst_5 = arith.constant 5.000000e-01 : f32
    %6 = vector.broadcast %cst_5 : f32 to vector<8x512xf32>
    %7 = arith.mulf %6, %5 : vector<8x512xf32>
    %8 = math.tanh %7 : vector<8x512xf32>
    %cst_6 = arith.constant 5.000000e-01 : f32
    %9 = vector.broadcast %cst_6 : f32 to vector<8x512xf32>
    %10 = arith.mulf %9, %8 : vector<8x512xf32>
    %cst_7 = arith.constant 5.000000e-01 : f32
    %11 = vector.broadcast %cst_7 : f32 to vector<8x512xf32>
    %12 = arith.addf %10, %11 : vector<8x512xf32>
    %13 = arith.truncf %12 : vector<8x512xf32> to vector<8x512xbf16>
    %c0_8 = arith.constant 0 : index
    %c0_9 = arith.constant 0 : index
    %14 = vector.load %arg4[%c0_8, %c0_9] : memref<512x512xbf16, #tpu.memory_space<vmem>>, vector<512x512xbf16>
    %cst_10 = arith.constant dense<0.000000e+00> : vector<8x512xf32>
    %15 = tpu.matmul %13, %14, %cst_10 {dimension_numbers = #tpu.dot_dimension_numbers<[1], [0], [0], [1], [0, 0, 1, 1], [], []>} : vector<8x512xbf16>, vector<512x512xbf16>, vector<8x512xf32> -> vector<8x512xf32>
    %c0_11 = arith.constant 0 : index
    %c0_12 = arith.constant 0 : index
    %16 = vector.load %arg5[%c0_11, %c0_12] : memref<1x512xf32, #tpu.memory_space<vmem>>, vector<1x512xf32>
    %17 = vector.broadcast %16 : vector<1x512xf32> to vector<8x512xf32>
    %18 = arith.addf %15, %17 : vector<8x512xf32>
    %cst_13 = arith.constant 5.000000e-01 : f32
    %19 = vector.broadcast %cst_13 : f32 to vector<8x512xf32>
    %20 = arith.mulf %19, %18 : vector<8x512xf32>
    %21 = math.tanh %20 : vector<8x512xf32>
    %cst_14 = arith.constant 5.000000e-01 : f32
    %22 = vector.broadcast %cst_14 : f32 to vector<8x512xf32>
    %23 = arith.mulf %22, %21 : vector<8x512xf32>
    %cst_15 = arith.constant 5.000000e-01 : f32
    %24 = vector.broadcast %cst_15 : f32 to vector<8x512xf32>
    %25 = arith.addf %23, %24 : vector<8x512xf32>
    %26 = arith.truncf %25 : vector<8x512xf32> to vector<8x512xbf16>
    %c0_16 = arith.constant 0 : index
    %c0_17 = arith.constant 0 : index
    %27 = vector.load %arg6[%c0_16, %c0_17] : memref<512x128xbf16, #tpu.memory_space<vmem>>, vector<512x128xbf16>
    %cst_18 = arith.constant dense<0.000000e+00> : vector<8x128xf32>
    %28 = tpu.matmul %26, %27, %cst_18 {dimension_numbers = #tpu.dot_dimension_numbers<[1], [0], [0], [1], [0, 0, 1, 1], [], []>} : vector<8x512xbf16>, vector<512x128xbf16>, vector<8x128xf32> -> vector<8x128xf32>
    %c0_19 = arith.constant 0 : index
    %c0_20 = arith.constant 0 : index
    %29 = vector.load %arg7[%c0_19, %c0_20] : memref<1x128xf32, #tpu.memory_space<vmem>>, vector<1x128xf32>
    %30 = vector.broadcast %29 : vector<1x128xf32> to vector<8x128xf32>
    %31 = arith.addf %28, %30 : vector<8x128xf32>
    %cst_21 = arith.constant 5.000000e-01 : f32
    %32 = vector.broadcast %cst_21 : f32 to vector<8x128xf32>
    %33 = arith.mulf %32, %31 : vector<8x128xf32>
    %34 = math.tanh %33 : vector<8x128xf32>
    %cst_22 = arith.constant 5.000000e-01 : f32
    %35 = vector.broadcast %cst_22 : f32 to vector<8x128xf32>
    %36 = arith.mulf %35, %34 : vector<8x128xf32>
    %cst_23 = arith.constant 5.000000e-01 : f32
    %37 = vector.broadcast %cst_23 : f32 to vector<8x128xf32>
    %38 = arith.addf %36, %37 : vector<8x128xf32>
    %39 = arith.truncf %38 : vector<8x128xf32> to vector<8x128xbf16>
    %c0_24 = arith.constant 0 : index
    %c0_25 = arith.constant 0 : index
    %40 = vector.load %arg8[%c0_24, %c0_25] : memref<128x128xbf16, #tpu.memory_space<vmem>>, vector<128x128xbf16>
    %cst_26 = arith.constant dense<0.000000e+00> : vector<8x128xf32>
    %41 = tpu.matmul %39, %40, %cst_26 {dimension_numbers = #tpu.dot_dimension_numbers<[1], [0], [0], [1], [0, 0, 1, 1], [], []>} : vector<8x128xbf16>, vector<128x128xbf16>, vector<8x128xf32> -> vector<8x128xf32>
    %c0_27 = arith.constant 0 : index
    %c0_28 = arith.constant 0 : index
    %42 = vector.load %arg9[%c0_27, %c0_28] : memref<1x128xf32, #tpu.memory_space<vmem>>, vector<1x128xf32>
    %43 = vector.broadcast %42 : vector<1x128xf32> to vector<8x128xf32>
    %44 = arith.addf %41, %43 : vector<8x128xf32>
    %c0_29 = arith.constant 0 : index
    %c0_30 = arith.constant 0 : index
    %45 = vector.load %arg10[%c0_29, %c0_30] : memref<8x128xf32, #tpu.memory_space<vmem>>, vector<8x128xf32>
    tpu.vector_store %arg10[%c0_29, %c0_30], %44 {strides = array<i32>} : memref<8x128xf32, #tpu.memory_space<vmem>>, vector<8x128xf32>,
    return
  }
  func.func @transform_0(%arg0: i32) -> (i32, i32) {
    %c0_i32 = arith.constant 0 : i32
    %c0_i32_0 = arith.constant 0 : i32
    return %arg0, %c0_i32 : i32, i32
  }
  func.func @transform_1(%arg0: i32) -> (i32, i32) {
    %c0_i32 = arith.constant 0 : i32
    %c0_i32_0 = arith.constant 0 : i32
    %c0_i32_1 = arith.constant 0 : i32
    return %c0_i32, %c0_i32_0 : i32, i32
  }
  func.func @transform_2(%arg0: i32) -> (i32, i32) {
    %c0_i32 = arith.constant 0 : i32
    %c0_i32_0 = arith.constant 0 : i32
    %c0_i32_1 = arith.constant 0 : i32
    return %c0_i32, %c0_i32_0 : i32, i32
  }
  func.func @transform_3(%arg0: i32) -> (i32, i32) {
    %c0_i32 = arith.constant 0 : i32
    %c0_i32_0 = arith.constant 0 : i32
    %c0_i32_1 = arith.constant 0 : i32
    return %c0_i32, %c0_i32_0 : i32, i32
  }
  func.func @transform_4(%arg0: i32) -> (i32, i32) {
    %c0_i32 = arith.constant 0 : i32
    %c0_i32_0 = arith.constant 0 : i32
    %c0_i32_1 = arith.constant 0 : i32
    return %c0_i32, %c0_i32_0 : i32, i32
  }
  func.func @transform_5(%arg0: i32) -> (i32, i32) {
    %c0_i32 = arith.constant 0 : i32
    %c0_i32_0 = arith.constant 0 : i32
    %c0_i32_1 = arith.constant 0 : i32
    return %c0_i32, %c0_i32_0 : i32, i32
  }
  func.func @transform_6(%arg0: i32) -> (i32, i32) {
    %c0_i32 = arith.constant 0 : i32
    %c0_i32_0 = arith.constant 0 : i32
    %c0_i32_1 = arith.constant 0 : i32
    return %c0_i32, %c0_i32_0 : i32, i32
  }
  func.func @transform_7(%arg0: i32) -> (i32, i32) {
    %c0_i32 = arith.constant 0 : i32
    %c0_i32_0 = arith.constant 0 : i32
    %c0_i32_1 = arith.constant 0 : i32
    return %c0_i32, %c0_i32_0 : i32, i32
  }
  func.func @transform_8(%arg0: i32) -> (i32, i32) {
    %c0_i32 = arith.constant 0 : i32
    %c0_i32_0 = arith.constant 0 : i32
    %c0_i32_1 = arith.constant 0 : i32
    return %c0_i32, %c0_i32_0 : i32, i32
  }
  func.func @transform_9(%arg0: i32) -> (i32, i32) {
    %c0_i32 = arith.constant 0 : i32
    %c0_i32_0 = arith.constant 0 : i32
    return %arg0, %c0_i32 : i32, i32
  }
}

</mosaic_0001>

<bundles_post_ra>
// kernel: simple_mlp_forward.1
= control target key start
LH: loop header
LB: loop body
LE: loop exit
PB: predicated region body
PF: predicated region fallthrough
CT: control target
= control target key end

     0   :  { %14 = vsyncpa [#allocation3], 0  ;;  %s2756_s0 = inlined_call_operand.vmem [shape: bf16[8,128], index: 0, kind: input, shape index: {}]   ;;  %s2757_s1 = inlined_call_operand.hbm [shape: bf16[128,512], index: 1, kind: input, shape index: {}]   ;;  %s2758_s2 = inlined_call_operand.vmem [shape: f32[1,512], index: 2, kind: input, shape index: {}]   ;;  %s2759_s3 = inlined_call_operand.hbm [shape: bf16[512,512], index: 3, kind: input, shape index: {}]   ;;  %s2760_s4 = inlined_call_operand.vmem [shape: f32[1,512], index: 4, kind: input, shape index: {}]   ;;  %s2761_s5 = inlined_call_operand.hbm [shape: bf16[512,128], index: 5, kind: input, shape index: {}]   ;;  %s2762_s6 = inlined_call_operand.vmem [shape: f32[1,128], index: 6, kind: input, shape index: {}]   ;;  %s2763_s7 = inlined_call_operand.hbm [shape: bf16[128,128], index: 7, kind: input, shape index: {}]   ;;  %s2764_s8 = inlined_call_operand.vmem [shape: f32[1,128], index: 8, kind: input, shape index: {}]   ;;  %s2765_s9 = inlined_call_operand.hbm [shape: f32[8,128], index: 9, kind: output, shape index: {}]  }
   0x1   :  { %15 = vsyncpa [#allocation6], 0 }
   0x2   :  { %16 = vsyncpa [#allocation9], 0 }
   0x3   :  { %17 = vsyncpa [#allocation4], 0  ;;  %s2572_s30 = smov [#allocation5]   ;;  %s2573_s11 = smov [#allocation2]  }
   0x4   :  { %s39_s10 = sshll.u32 %s2572_s30, 4  ;;  %s25_s12 = sshll.u32 %s2573_s11, 4  ;;  %s40_s10 = int_to_ptr.vmem [resolvable:$true] %s39_s10  ;;  %s2634_s12 = int_to_ptr.vmem [resolvable:$true] %s25_s12 }
   0x5   :  { %s2454_s15 = scalar_lea.hbm %s2759_s3, 16384 }
   0x6   :  { %p2455_p0 = scmp.ne.s32.totalorder %s2759_s3, %s2454_s15  ;;  %p2458_p1 = scmp.lt.u32.totalorder %s2454_s15, %s2759_s3 }
   0x8   :  { %p2460_p2 = pnand %p2458_p1, %p2455_p0 }
   0xa   :  { %2463 = shalt.err (!%p2460_p2)
}
   0xb   :  { %s2464_s20 = scalar_lea.vmem %s40_s10, 16384  ;;  %p2469_p4 = scmp.lt.s32.totalorder %s40_s10, %s40_s10 }
   0xc   :  { %p2465_p3 = scmp.ne.s32.totalorder %s40_s10, %s2464_s20  ;;  %p2470_p5 = scmp.lt.s32.totalorder %s2464_s20, %s2464_s20 }
   0xe   :  { %p2471_p6 = por %p2470_p5, %p2469_p4 }
  0x10   :  { %p2472_p7 = pnand %p2471_p6, %p2465_p3 }
  0x12   :  { %2475 = shalt.err (!%p2472_p7)
}
  0x13   :  { %s2574_s21 = smov 256   ;;  %s2575_s22 = smov 16  }
  0x14   :  { %45 = dma.hbm_to_vmem [thread:$0]  %s2759_s3, 16384, %s40_s10, [#allocation6], %s2574_s21, %s2574_s21, %s2575_s22  }
  0x15   :  { %s2476_s27 = scalar_lea.hbm %s2757_s1, 4096 }
  0x16   :  { %p2477_p8 = scmp.ne.s32.totalorder %s2757_s1, %s2476_s27  ;;  %p2480_p9 = scmp.lt.u32.totalorder %s2476_s27, %s2757_s1 }
  0x18   :  { %p2482_p10 = pnand %p2480_p9, %p2477_p8 }
  0x1a   :  { %2485 = shalt.err (!%p2482_p10)
}
  0x1b   :  { %s2486_s13 = scalar_lea.vmem %s2634_s12, 4096  ;;  %p2491_p12 = scmp.lt.s32.totalorder %s2634_s12, %s2634_s12 }
  0x1c   :  { %p2487_p11 = scmp.ne.s32.totalorder %s2634_s12, %s2486_s13  ;;  %p2492_p13 = scmp.lt.s32.totalorder %s2486_s13, %s2486_s13 }
  0x1e   :  { %p2493_p0 = por %p2492_p13, %p2491_p12 }
  0x20   :  { %p2494_p1 = pnand %p2493_p0, %p2487_p11 }
  0x22   :  { %2497 = shalt.err (!%p2494_p1)
}
  0x23   :  { %31 = dma.hbm_to_vmem [thread:$0]  %s2757_s1, 4096, %s2634_s12, [#allocation3], %s2574_s21, %s2574_s21, %s2575_s22  }
  0x24   :  { %s2576_s14 = smov [#allocation7]   ;;  %s2498_s18 = scalar_lea.hbm %s2761_s5, 4096 }
  0x25   :  { %s53_s15 = sshll.u32 %s2576_s14, 4  ;;  %p2499_p2 = scmp.ne.s32.totalorder %s2761_s5, %s2498_s18  ;;  %s54_s15 = int_to_ptr.vmem [resolvable:$true] %s53_s15 }
  0x26   :  { %p2502_p3 = scmp.lt.u32.totalorder %s2498_s18, %s2761_s5 }
  0x28   :  { %p2504_p4 = pnand %p2502_p3, %p2499_p2 }
  0x2a   :  { %2507 = shalt.err (!%p2504_p4)
}
  0x2b   :  { %s2508_s25 = scalar_lea.vmem %s54_s15, 4096  ;;  %p2513_p6 = scmp.lt.s32.totalorder %s54_s15, %s54_s15 }
  0x2c   :  { %p2509_p5 = scmp.ne.s32.totalorder %s54_s15, %s2508_s25  ;;  %p2514_p7 = scmp.lt.s32.totalorder %s2508_s25, %s2508_s25 }
  0x2e   :  { %p2515_p8 = por %p2514_p7, %p2513_p6 }
  0x30   :  { %p2516_p9 = pnand %p2515_p8, %p2509_p5 }
  0x32   :  { %2519 = shalt.err (!%p2516_p9)
}
  0x33   :  { %s2577_s1 = smov 64   ;;  %s2578_s12 = smov 4  }
  0x34   :  { %59 = dma.hbm_to_vmem [thread:$0]  %s2761_s5, 4096, %s54_s15, [#allocation6], %s2577_s1, %s2577_s1, %s2578_s12  }
  0x35   :  { %s2579_s26 = smov [#allocation8]   ;;  %s2520_s30 = scalar_lea.hbm %s2763_s7, 1024 }
  0x36   :  { %s67_s27 = sshll.u32 %s2579_s26, 4  ;;  %p2521_p10 = scmp.ne.s32.totalorder %s2763_s7, %s2520_s30  ;;  %s68_s27 = int_to_ptr.vmem [resolvable:$true] %s67_s27 }
  0x37   :  { %p2524_p11 = scmp.lt.u32.totalorder %s2520_s30, %s2763_s7 }
  0x39   :  { %p2526_p12 = pnand %p2524_p11, %p2521_p10 }
  0x3b   :  { %2529 = shalt.err (!%p2526_p12)
}
  0x3c   :  { %s2530_s14 = scalar_lea.vmem %s68_s27, 1024  ;;  %p2535_p0 = scmp.lt.s32.totalorder %s68_s27, %s68_s27 }
  0x3d   :  { %p2531_p13 = scmp.ne.s32.totalorder %s68_s27, %s2530_s14  ;;  %p2536_p1 = scmp.lt.s32.totalorder %s2530_s14, %s2530_s14 }
  0x3f   :  { %p2537_p2 = por %p2536_p1, %p2535_p0 }
  0x41   :  { %p2538_p3 = pnand %p2537_p2, %p2531_p13 }
  0x43   :  { %2541 = shalt.err (!%p2538_p3)
}
  0x44   :  { %73 = dma.hbm_to_vmem [thread:$0]  %s2763_s7, 1024, %s68_s27, [#allocation9], %s2577_s1, %s2577_s1, %s2578_s12  }
  0x45   :  { %2564 = dma.done.wait [#allocation3], 4096  }
  0x46   :  { %2565 = vsyncadd [#allocation3], 4294963200 }
  0x47   :  { %2566 = dma.done.wait [#allocation6], 20480  }
  0x48   :  { %2567 = vsyncadd [#allocation6], 4294946816 }
  0x49   :  { %2568 = dma.done.wait [#allocation9], 1024  }
  0x4a   :  { %2569 = vsyncadd [#allocation9], 4294966272  ;;  %v2580_v0 = vmov 0   ;;  %v2156_v1 = vld [vmem:[#allocation2 + $0x4] ss:$16 sps:$4 sm:$0xff]   ;;  %vm2582_vm0 = vmmov 0  }
  0x4b   :  { %336 = vmatprep.mubr.bf16.mxu0 %v2580_v0  ;;  %377 = vmatprep.mubr.bf16.mxu1 %v2580_v0  ;;  %v2158_v2 = vld [vmem:[#allocation2] ss:$16 sps:$4 sm:$0xff]   ;;  %v2159_v3 = vld [vmem:[#allocation2 + $0x24] ss:$16 sps:$4 sm:$0xff]   ;;  %v2180_v10 = vld [vmem:[#allocation2 + $0xc] ss:$16 sps:$4 sm:$0xff]  }
  0x4c   :  { %304 = vmatprep.subr.bf16.mxu0 %v2156_v1  ;;  %v2161_v4 = vld [vmem:[#allocation2 + $0x20] ss:$16 sps:$4 sm:$0xff]   ;;  %v2162_v5 = vld [vmem:[#allocation2 + $0x44] ss:$16 sps:$4 sm:$0xff]   ;;  %v2182_v11 = vld [vmem:[#allocation2 + $0x8] ss:$16 sps:$4 sm:$0xff]   ;;  %345 = vmatprep.subr.bf16.mxu1 %v2180_v10 }
  0x4d   :  { %305 = vmatpush1.bf16.msra.mxu0 %v2158_v2  ;;  %v2164_v6 = vld [vmem:[#allocation2 + $0x40] ss:$16 sps:$4 sm:$0xff]   ;;  %v2165_v7 = vld [vmem:[#allocation2 + $0x64] ss:$16 sps:$4 sm:$0xff]   ;;  %v2183_v12 = vld [vmem:[#allocation2 + $0x2c] ss:$16 sps:$4 sm:$0xff]   ;;  %346 = vmatpush1.bf16.msra.mxu1 %v2182_v11 }
  0x4e   :  { %306 = vmatprep.subr.bf16.mxu0 %v2159_v3  ;;  %v2167_v8 = vld [vmem:[#allocation2 + $0x60] ss:$16 sps:$4 sm:$0xff]   ;;  %v2168_v9 = vld [vmem:[#allocation2 + $0x84] ss:$16 sps:$4 sm:$0xff]   ;;  %v2185_v14 = vld [vmem:[#allocation2 + $0x28] ss:$16 sps:$4 sm:$0xff]   ;;  %347 = vmatprep.subr.bf16.mxu1 %v2183_v12 }
  0x4f   :  { %v2170_v13 = vld [vmem:[#allocation2 + $0x80] ss:$16 sps:$4 sm:$0xff]   ;;  %v2186_v15 = vld [vmem:[#allocation2 + $0x4c] ss:$16 sps:$4 sm:$0xff]   ;;  %v2171_v16 = vld [vmem:[#allocation2 + $0xa4] ss:$16 sps:$4 sm:$0xff]  }
  0x50   :  { %v2173_v17 = vld [vmem:[#allocation2 + $0xa0] ss:$16 sps:$4 sm:$0xff]   ;;  %v2188_v18 = vld [vmem:[#allocation2 + $0x48] ss:$16 sps:$4 sm:$0xff]   ;;  %v2189_v19 = vld [vmem:[#allocation2 + $0x6c] ss:$16 sps:$4 sm:$0xff]  }
  0x51   :  { %307 = vmatpush1.bf16.msra.mxu0 %v2161_v4  ;;  %348 = vmatpush1.bf16.msra.mxu1 %v2185_v14  ;;  %v2174_v20 = vld [vmem:[#allocation2 + $0xc4] ss:$16 sps:$4 sm:$0xff]   ;;  %v2176_v21 = vld [vmem:[#allocation2 + $0xc0] ss:$16 sps:$4 sm:$0xff]   ;;  %v2191_v22 = vld [vmem:[#allocation2 + $0x68] ss:$16 sps:$4 sm:$0xff]  }
  0x52   :  { %308 = vmatprep.subr.bf16.mxu0 %v2162_v5  ;;  %349 = vmatprep.subr.bf16.mxu1 %v2186_v15  ;;  %v2192_v23 = vld [vmem:[#allocation2 + $0x8c] ss:$16 sps:$4 sm:$0xff]   ;;  %v2177_v24 = vld [vmem:[#allocation2 + $0xe4] ss:$16 sps:$4 sm:$0xff]   ;;  %v2179_v25 = vld [vmem:[#allocation2 + $0xe0] ss:$16 sps:$4 sm:$0xff]  }
  0x53   :  { %v2194_v26 = vld [vmem:[#allocation2 + $0x88] ss:$16 sps:$4 sm:$0xff]   ;;  %v2195_v27 = vld [vmem:[#allocation2 + $0xac] ss:$16 sps:$4 sm:$0xff]   ;;  %v2206_v28 = vld [vmem:[#allocation5 + $0x4] ss:$16 sps:$4 sm:$0xff]  }
  0x54   :  { %v89_v29 = vld [vmem:[%s2756_s0] sm:$0xf]  ;;  %v2197_v30 = vld [vmem:[#allocation2 + $0xa8] ss:$16 sps:$4 sm:$0xff]   ;;  %v2198_v31 = vld [vmem:[#allocation2 + $0xcc] ss:$16 sps:$4 sm:$0xff]  }
  0x55   :  { %309 = vmatpush1.bf16.msra.mxu0 %v2164_v6  ;;  %350 = vmatpush1.bf16.msra.mxu1 %v2188_v18  ;;  %v2204_v32 = vld [vmem:[#allocation5] ss:$16 sps:$4 sm:$0xff]   ;;  %v2212_v33 = vld [vmem:[#allocation5 + $0x24] ss:$16 sps:$4 sm:$0xff]   ;;  %v2200_v34 = vld [vmem:[#allocation2 + $0xc8] ss:$16 sps:$4 sm:$0xff]  }
  0x56   :  { %310 = vmatprep.subr.bf16.mxu0 %v2165_v7  ;;  %351 = vmatprep.subr.bf16.mxu1 %v2189_v19  ;;  %v2201_v35 = vld [vmem:[#allocation2 + $0xec] ss:$16 sps:$4 sm:$0xff]   ;;  %v2210_v36 = vld [vmem:[#allocation5 + $0x20] ss:$16 sps:$4 sm:$0xff]   ;;  %v2218_v37 = vld [vmem:[#allocation5 + $0x44] ss:$16 sps:$4 sm:$0xff]  }
  0x57   :  { %v2203_v38 = vld [vmem:[#allocation2 + $0xe8] ss:$16 sps:$4 sm:$0xff]   ;;  %v2209_v39 = vld [vmem:[#allocation5 + $0xc] ss:$16 sps:$4 sm:$0xff]   ;;  %v2216_v40 = vld [vmem:[#allocation5 + $0x40] ss:$16 sps:$4 sm:$0xff]  }
  0x58   :  { %v2224_v41 = vld [vmem:[#allocation5 + $0x64] ss:$16 sps:$4 sm:$0xff]   ;;  %v2207_v42 = vld [vmem:[#allocation5 + $0x8] ss:$16 sps:$4 sm:$0xff]   ;;  %v2215_v43 = vld [vmem:[#allocation5 + $0x2c] ss:$16 sps:$4 sm:$0xff]  }
  0x59   :  { %311 = vmatpush1.bf16.msra.mxu0 %v2167_v8  ;;  %352 = vmatpush1.bf16.msra.mxu1 %v2191_v22  ;;  %v2222_v44 = vld [vmem:[#allocation5 + $0x60] ss:$16 sps:$4 sm:$0xff]   ;;  %v2230_v45 = vld [vmem:[#allocation5 + $0x84] ss:$16 sps:$4 sm:$0xff]   ;;  %v2213_v46 = vld [vmem:[#allocation5 + $0x28] ss:$16 sps:$4 sm:$0xff]  }
  0x5a   :  { %312 = vmatprep.subr.bf16.mxu0 %v2168_v9  ;;  %353 = vmatprep.subr.bf16.mxu1 %v2192_v23  ;;  %v2221_v47 = vld [vmem:[#allocation5 + $0x4c] ss:$16 sps:$4 sm:$0xff]   ;;  %v2228_v48 = vld [vmem:[#allocation5 + $0x80] ss:$16 sps:$4 sm:$0xff]   ;;  %v2236_v49 = vld [vmem:[#allocation5 + $0xa4] ss:$16 sps:$4 sm:$0xff]  }
  0x5b   :  { %v2219_v50 = vld [vmem:[#allocation5 + $0x48] ss:$16 sps:$4 sm:$0xff]   ;;  %v2227_v51 = vld [vmem:[#allocation5 + $0x6c] ss:$16 sps:$4 sm:$0xff]   ;;  %v2234_v52 = vld [vmem:[#allocation5 + $0xa0] ss:$16 sps:$4 sm:$0xff]  }
  0x5c   :  { %v2242_v53 = vld [vmem:[#allocation5 + $0xc4] ss:$16 sps:$4 sm:$0xff]   ;;  %v2225_v54 = vld [vmem:[#allocation5 + $0x68] ss:$16 sps:$4 sm:$0xff]   ;;  %v2233_v55 = vld [vmem:[#allocation5 + $0x8c] ss:$16 sps:$4 sm:$0xff]  }
  0x5d   :  { %313 = vmatpush1.bf16.msra.mxu0 %v2170_v13  ;;  %354 = vmatpush1.bf16.msra.mxu1 %v2194_v26  ;;  %v2240_v56 = vld [vmem:[#allocation5 + $0xc0] ss:$16 sps:$4 sm:$0xff]   ;;  %v2248_v57 = vld [vmem:[#allocation5 + $0xe4] ss:$16 sps:$4 sm:$0xff]   ;;  %v2231_v58 = vld [vmem:[#allocation5 + $0x88] ss:$16 sps:$4 sm:$0xff]  }
  0x5e   :  { %314 = vmatprep.subr.bf16.mxu0 %v2171_v16  ;;  %355 = vmatprep.subr.bf16.mxu1 %v2195_v27  ;;  %v2239_v59 = vld [vmem:[#allocation5 + $0xac] ss:$16 sps:$4 sm:$0xff]   ;;  %v2246_v60 = vld [vmem:[#allocation5 + $0xe0] ss:$16 sps:$4 sm:$0xff]   ;;  %v2254_v61 = vld [vmem:[#allocation5 + $0x104] ss:$16 sps:$4 sm:$0xff]  }
  0x5f   :  { %v2237_v62 = vld [vmem:[#allocation5 + $0xa8] ss:$16 sps:$4 sm:$0xff]   ;;  %v2245_v63 = vld [vmem:[#allocation5 + $0xcc] ss:$16 sps:$4 sm:$0xff]   ;;  %v2252_v0 = vld [vmem:[#allocation5 + $0x100] ss:$16 sps:$4 sm:$0xff]  }
  0x60   :  { %v2260_v1 = vld [vmem:[#allocation5 + $0x124] ss:$16 sps:$4 sm:$0xff]   ;;  %v2243_v2 = vld [vmem:[#allocation5 + $0xc8] ss:$16 sps:$4 sm:$0xff]   ;;  %v2251_v3 = vld [vmem:[#allocation5 + $0xec] ss:$16 sps:$4 sm:$0xff]  }
  0x61   :  { %315 = vmatpush1.bf16.msra.mxu0 %v2173_v17  ;;  %356 = vmatpush1.bf16.msra.mxu1 %v2197_v30  ;;  %v2258_v4 = vld [vmem:[#allocation5 + $0x120] ss:$16 sps:$4 sm:$0xff]   ;;  %v2266_v5 = vld [vmem:[#allocation5 + $0x144] ss:$16 sps:$4 sm:$0xff]   ;;  %v2249_v6 = vld [vmem:[#allocation5 + $0xe8] ss:$16 sps:$4 sm:$0xff]  }
  0x62   :  { %316 = vmatprep.subr.bf16.mxu0 %v2174_v20  ;;  %357 = vmatprep.subr.bf16.mxu1 %v2198_v31  ;;  %v2257_v7 = vld [vmem:[#allocation5 + $0x10c] ss:$16 sps:$4 sm:$0xff]   ;;  %v2264_v8 = vld [vmem:[#allocation5 + $0x140] ss:$16 sps:$4 sm:$0xff]   ;;  %v2255_v9 = vld [vmem:[#allocation5 + $0x108] ss:$16 sps:$4 sm:$0xff]  }
  0x63   :  { %v2263_v10 = vld [vmem:[#allocation5 + $0x12c] ss:$16 sps:$4 sm:$0xff]   ;;  %v2261_v11 = vld [vmem:[#allocation5 + $0x128] ss:$16 sps:$4 sm:$0xff]   ;;  %v2272_v14 = vld [vmem:[#allocation5 + $0x164] ss:$16 sps:$4 sm:$0xff]  }
  0x64   :  { %v2269_v12 = vld [vmem:[#allocation5 + $0x14c] ss:$16 sps:$4 sm:$0xff]   ;;  %v2267_v13 = vld [vmem:[#allocation5 + $0x148] ss:$16 sps:$4 sm:$0xff]   ;;  %v2270_v16 = vld [vmem:[#allocation5 + $0x160] ss:$16 sps:$4 sm:$0xff]  }
  0x65   :  { %317 = vmatpush1.bf16.msra.mxu0 %v2176_v21  ;;  %358 = vmatpush1.bf16.msra.mxu1 %v2200_v34  ;;  %v2275_v15 = vld [vmem:[#allocation5 + $0x16c] ss:$16 sps:$4 sm:$0xff]   ;;  %v2273_v17 = vld [vmem:[#allocation5 + $0x168] ss:$16 sps:$4 sm:$0xff]   ;;  %v2278_v18 = vld [vmem:[#allocation5 + $0x184] ss:$16 sps:$4 sm:$0xff]  }
  0x66   :  { %318 = vmatprep.subr.bf16.mxu0 %v2177_v24  ;;  %359 = vmatprep.subr.bf16.mxu1 %v2201_v35  ;;  %v2281_v19 = vld [vmem:[#allocation5 + $0x18c] ss:$16 sps:$4 sm:$0xff]   ;;  %v2276_v20 = vld [vmem:[#allocation5 + $0x180] ss:$16 sps:$4 sm:$0xff]   ;;  %v2279_v21 = vld [vmem:[#allocation5 + $0x188] ss:$16 sps:$4 sm:$0xff]  }
  0x67   :  { %v2284_v22 = vld [vmem:[#allocation5 + $0x1a4] ss:$16 sps:$4 sm:$0xff]   ;;  %v2287_v23 = vld [vmem:[#allocation5 + $0x1ac] ss:$16 sps:$4 sm:$0xff]   ;;  %v2282_v24 = vld [vmem:[#allocation5 + $0x1a0] ss:$16 sps:$4 sm:$0xff]  }
  0x68   :  { %v2290_v26 = vld [vmem:[#allocation5 + $0x1c4] ss:$16 sps:$4 sm:$0xff]   ;;  %v2293_v27 = vld [vmem:[#allocation5 + $0x1cc] ss:$16 sps:$4 sm:$0xff]  }
  0x69   :  { %319 = vmatpush1.bf16.msra.mxu0 %v2179_v25  ;;  %360 = vmatpush1.bf16.msra.mxu1 %v2203_v38  ;;  %v2285_v25 = vld [vmem:[#allocation5 + $0x1a8] ss:$16 sps:$4 sm:$0xff]   ;;  %v2296_v30 = vld [vmem:[#allocation5 + $0x1e4] ss:$16 sps:$4 sm:$0xff]   ;;  %v2299_v31 = vld [vmem:[#allocation5 + $0x1ec] ss:$16 sps:$4 sm:$0xff]  }
  0x6a   :  { %1196 = vmatprep.subr.bf16.mxu0 %v2206_v28  ;;  %1278 = vmatprep.subr.bf16.mxu1 %v2209_v39  ;;  %v2288_v28 = vld [vmem:[#allocation5 + $0x1c0] ss:$16 sps:$4 sm:$0xff]   ;;  %v2302_v34 = vld [vmem:[#allocation5 + $0x204] ss:$16 sps:$4 sm:$0xff]   ;;  %v2305_v35 = vld [vmem:[#allocation5 + $0x20c] ss:$16 sps:$4 sm:$0xff]  }
  0x6b   :  { %v2698_v39 = vld [vmem:[%s2758_s2] sm:$0xf] }
  0x6c   :  { %337 = vmatmul.mubr.bf16.vlgmr.msra.gmra.mrb[0].mxu0 %v89_v29  ;;  %378 = vmatmul.mubr.bf16.vlgmr.msra.gmra.mrb[0].mxu1 %v89_v29  ;;  %v2291_v29 = vld [vmem:[#allocation5 + $0x1c8] ss:$16 sps:$4 sm:$0xff]  }
  0x6d   :  { %1197 = vmatpush1.bf16.msra.mxu0 %v2204_v32  ;;  %1279 = vmatpush1.bf16.msra.mxu1 %v2207_v42  ;;  %v2294_v32 = vld [vmem:[#allocation5 + $0x1e0] ss:$16 sps:$4 sm:$0xff]  }
  0x6e   :  { %1198 = vmatprep.subr.bf16.mxu0 %v2212_v33  ;;  %1280 = vmatprep.subr.bf16.mxu1 %v2215_v43  ;;  %v2297_v33 = vld [vmem:[#allocation5 + $0x1e8] ss:$16 sps:$4 sm:$0xff]  }
  0x71   :  { %1199 = vmatpush1.bf16.msra.mxu0 %v2210_v36  ;;  %1281 = vmatpush1.bf16.msra.mxu1 %v2213_v46  ;;  %v124_v36 = vlaneseq }
  0x72   :  { %1200 = vmatprep.subr.bf16.mxu0 %v2218_v37  ;;  %1282 = vmatprep.subr.bf16.mxu1 %v2221_v47 }
  0x73   :  { %v2692_v37 = vshrl.u32 %v124_v36, 7  ;;  %v2345_v36 = vld [vmem:[#allocation5 + $0x2e8] ss:$16 sps:$4 sm:$0xff]  }
  0x75   :  { %1201 = vmatpush1.bf16.msra.mxu0 %v2216_v40  ;;  %1283 = vmatpush1.bf16.msra.mxu1 %v2219_v50  ;;  %v126_v38 = vsub.s32 0, %v2692_v37  ;;  %v130_v40 = vsub.s32 1, %v2692_v37 }
  0x76   :  { %1202 = vmatprep.subr.bf16.mxu0 %v2224_v41  ;;  %1284 = vmatprep.subr.bf16.mxu1 %v2227_v51  ;;  %v138_v51 = vsub.s32 3, %v2692_v37 }
  0x77   :  { %v127_v41 = vrot.slane %v2698_v39, %v126_v38  ;;  %v131_v42 = vrot.slane %v2698_v39, %v130_v40 }
  0x79   :  { %1203 = vmatpush1.bf16.msra.mxu0 %v2222_v44  ;;  %1285 = vmatpush1.bf16.msra.mxu1 %v2225_v54 }
  0x7a   :  { %1204 = vmatprep.subr.bf16.mxu0 %v2230_v45  ;;  %1286 = vmatprep.subr.bf16.mxu1 %v2233_v55 }
  0x7d   :  { %1205 = vmatpush1.bf16.msra.mxu0 %v2228_v48  ;;  %1287 = vmatpush1.bf16.msra.mxu1 %v2231_v58 }
  0x7e   :  { %1206 = vmatprep.subr.bf16.mxu0 %v2236_v49  ;;  %1288 = vmatprep.subr.bf16.mxu1 %v2239_v59 }
  0x81   :  { %1207 = vmatpush1.bf16.msra.mxu0 %v2234_v52  ;;  %1289 = vmatpush1.bf16.msra.mxu1 %v2237_v62  ;;  %v139_v52 = vrot.slane %v2698_v39, %v138_v51 }
  0x82   :  { %1208 = vmatprep.subr.bf16.mxu0 %v2242_v53  ;;  %1290 = vmatprep.subr.bf16.mxu1 %v2245_v63 }
  0x85   :  { %1209 = vmatpush1.bf16.msra.mxu0 %v2240_v56  ;;  %1291 = vmatpush1.bf16.msra.mxu1 %v2243_v2  ;;  %v2300_v2 = vld [vmem:[#allocation5 + $0x200] ss:$16 sps:$4 sm:$0xff]  }
  0x86   :  { %1210 = vmatprep.subr.bf16.mxu0 %v2248_v57  ;;  %1292 = vmatprep.subr.bf16.mxu1 %v2251_v3  ;;  %v2303_v3 = vld [vmem:[#allocation5 + $0x208] ss:$16 sps:$4 sm:$0xff]  }
  0x89   :  { %1211 = vmatpush1.bf16.msra.mxu0 %v2246_v60  ;;  %1293 = vmatpush1.bf16.msra.mxu1 %v2249_v6  ;;  %v2311_v6 = vld [vmem:[#allocation5 + $0x22c] ss:$16 sps:$4 sm:$0xff]  }
  0x8a   :  { %1212 = vmatprep.subr.bf16.mxu0 %v2254_v61  ;;  %1294 = vmatprep.subr.bf16.mxu1 %v2257_v7  ;;  %v2306_v7 = vld [vmem:[#allocation5 + $0x220] ss:$16 sps:$4 sm:$0xff]  }
  0x8d   :  { %1213 = vmatpush1.bf16.msra.mxu0 %v2252_v0  ;;  %1295 = vmatpush1.bf16.msra.mxu1 %v2255_v9  ;;  %v2314_v9 = vld [vmem:[#allocation5 + $0x244] ss:$16 sps:$4 sm:$0xff]  }
  0x8e   :  { %1214 = vmatprep.subr.bf16.mxu0 %v2260_v1  ;;  %1296 = vmatprep.subr.bf16.mxu1 %v2263_v10  ;;  %v2317_v10 = vld [vmem:[#allocation5 + $0x24c] ss:$16 sps:$4 sm:$0xff]  }
  0x91   :  { %1215 = vmatpush1.bf16.msra.mxu0 %v2258_v4  ;;  %1297 = vmatpush1.bf16.msra.mxu1 %v2261_v11 }
  0x92   :  { %1216 = vmatprep.subr.bf16.mxu0 %v2266_v5  ;;  %1298 = vmatprep.subr.bf16.mxu1 %v2269_v12  ;;  %v2308_v5 = vld [vmem:[#allocation5 + $0x224] ss:$16 sps:$4 sm:$0xff]  }
  0x95   :  { %1217 = vmatpush1.bf16.msra.mxu0 %v2264_v8  ;;  %1299 = vmatpush1.bf16.msra.mxu1 %v2267_v13  ;;  %v2309_v8 = vld [vmem:[#allocation5 + $0x228] ss:$16 sps:$4 sm:$0xff]   ;;  %v2312_v13 = vld [vmem:[#allocation5 + $0x240] ss:$16 sps:$4 sm:$0xff]  }
  0x96   :  { %1218 = vmatprep.subr.bf16.mxu0 %v2272_v14  ;;  %1300 = vmatprep.subr.bf16.mxu1 %v2275_v15  ;;  %v2315_v14 = vld [vmem:[#allocation5 + $0x248] ss:$16 sps:$4 sm:$0xff]   ;;  %v2320_v15 = vld [vmem:[#allocation5 + $0x264] ss:$16 sps:$4 sm:$0xff]  }
  0x99   :  { %1219 = vmatpush1.bf16.msra.mxu0 %v2270_v16  ;;  %1301 = vmatpush1.bf16.msra.mxu1 %v2273_v17  ;;  %v2323_v16 = vld [vmem:[#allocation5 + $0x26c] ss:$16 sps:$4 sm:$0xff]  }
  0x9a   :  { %1220 = vmatprep.subr.bf16.mxu0 %v2278_v18  ;;  %1302 = vmatprep.subr.bf16.mxu1 %v2281_v19  ;;  %v2318_v19 = vld [vmem:[#allocation5 + $0x260] ss:$16 sps:$4 sm:$0xff]  }
  0x9d   :  { %1221 = vmatpush1.bf16.msra.mxu0 %v2276_v20  ;;  %1303 = vmatpush1.bf16.msra.mxu1 %v2279_v21  ;;  %v2321_v20 = vld [vmem:[#allocation5 + $0x268] ss:$16 sps:$4 sm:$0xff]   ;;  %v2326_v21 = vld [vmem:[#allocation5 + $0x284] ss:$16 sps:$4 sm:$0xff]  }
  0x9e   :  { %1222 = vmatprep.subr.bf16.mxu0 %v2284_v22  ;;  %1304 = vmatprep.subr.bf16.mxu1 %v2287_v23  ;;  %v2329_v22 = vld [vmem:[#allocation5 + $0x28c] ss:$16 sps:$4 sm:$0xff]   ;;  %v2324_v23 = vld [vmem:[#allocation5 + $0x280] ss:$16 sps:$4 sm:$0xff]  }
  0xa1   :  { %1223 = vmatpush1.bf16.msra.mxu0 %v2282_v24  ;;  %1305 = vmatpush1.bf16.msra.mxu1 %v2285_v25  ;;  %v2327_v24 = vld [vmem:[#allocation5 + $0x288] ss:$16 sps:$4 sm:$0xff]   ;;  %v2332_v25 = vld [vmem:[#allocation5 + $0x2a4] ss:$16 sps:$4 sm:$0xff]  }
  0xa2   :  { %1224 = vmatprep.subr.bf16.mxu0 %v2290_v26  ;;  %1306 = vmatprep.subr.bf16.mxu1 %v2293_v27  ;;  %v2335_v26 = vld [vmem:[#allocation5 + $0x2ac] ss:$16 sps:$4 sm:$0xff]   ;;  %v2330_v27 = vld [vmem:[#allocation5 + $0x2a0] ss:$16 sps:$4 sm:$0xff]  }
  0xa5   :  { %1225 = vmatpush1.bf16.msra.mxu0 %v2288_v28  ;;  %1307 = vmatpush1.bf16.msra.mxu1 %v2291_v29  ;;  %v2333_v28 = vld [vmem:[#allocation5 + $0x2a8] ss:$16 sps:$4 sm:$0xff]   ;;  %v2338_v29 = vld [vmem:[#allocation5 + $0x2c4] ss:$16 sps:$4 sm:$0xff]  }
  0xa6   :  { %1226 = vmatprep.subr.bf16.mxu0 %v2296_v30  ;;  %1308 = vmatprep.subr.bf16.mxu1 %v2299_v31  ;;  %v2341_v30 = vld [vmem:[#allocation5 + $0x2cc] ss:$16 sps:$4 sm:$0xff]   ;;  %v2336_v31 = vld [vmem:[#allocation5 + $0x2c0] ss:$16 sps:$4 sm:$0xff]  }
  0xa9   :  { %1227 = vmatpush1.bf16.msra.mxu0 %v2294_v32  ;;  %1309 = vmatpush1.bf16.msra.mxu1 %v2297_v33  ;;  %v2339_v32 = vld [vmem:[#allocation5 + $0x2c8] ss:$16 sps:$4 sm:$0xff]   ;;  %v2344_v33 = vld [vmem:[#allocation5 + $0x2e4] ss:$16 sps:$4 sm:$0xff]  }
  0xaa   :  { %1237 = vmatprep.subr.bf16.mxu0 %v2302_v34  ;;  %1319 = vmatprep.subr.bf16.mxu1 %v2305_v35  ;;  %v2347_v34 = vld [vmem:[#allocation5 + $0x2ec] ss:$16 sps:$4 sm:$0xff]   ;;  %v2342_v35 = vld [vmem:[#allocation5 + $0x2e0] ss:$16 sps:$4 sm:$0xff]  }
 0x13f   :  { %v338_v43 = vpop.f32.mrb[0].mxu0  ;;  %v2711_v53 = vpop.f32.mrb[0].mxu1 }
 0x140   :  { %v339_v44 = vadd.f32 %v338_v43, %v127_v41  ;;  %v340_v45 = vpop.f32.mrb[1].mxu0  ;;  %v381_v54 = vpop.f32.mrb[1].mxu1  ;;  %v134_v41 = vsub.s32 2, %v2692_v37  ;;  %v2353_v43 = vld [vmem:[#allocation5 + $0x30c] ss:$16 sps:$4 sm:$0xff]  }
 0x141   :  { %v341_v46 = vadd.f32 %v340_v45, %v131_v42  ;;  %v342_v47 = vpop.f32.mrb[2].mxu0  ;;  %v382_v55 = vadd.f32 %v381_v54, %v139_v52  ;;  %v383_v56 = vpop.f32.mrb[2].mxu1  ;;  %v2350_v42 = vld [vmem:[#allocation5 + $0x304] ss:$16 sps:$4 sm:$0xff]   ;;  %v2351_v45 = vld [vmem:[#allocation5 + $0x308] ss:$16 sps:$4 sm:$0xff]  }
 0x142   :  { %v386_v48 = vmul.f32 0.5, %v339_v44  ;;  %v343_v49 = vpop.f32.mrb[3].mxu0  ;;  %v384_v57 = vpop.f32.mrb[3].mxu1  ;;  %v2348_v44 = vld [vmem:[#allocation5 + $0x300] ss:$16 sps:$4 sm:$0xff]  }
 0x143   :  { %v387_v50 = vmul.f32 0.5, %v341_v46  ;;  %v389_v59 = vmul.f32 0.5, %v382_v55  ;;  %v135_v46 = vrot.slane %v2698_v39, %v134_v41  ;;  %v2356_v47 = vld [vmem:[#allocation5 + $0x324] ss:$16 sps:$4 sm:$0xff]   ;;  %v2354_v49 = vld [vmem:[#allocation5 + $0x320] ss:$16 sps:$4 sm:$0xff]  }
 0x144   :  { %2436 = vtanh.f32 %v386_v48  ;;  %v2359_v48 = vld [vmem:[#allocation5 + $0x32c] ss:$16 sps:$4 sm:$0xff]   ;;  %v2362_v54 = vld [vmem:[#allocation5 + $0x344] ss:$16 sps:$4 sm:$0xff]   ;;  %v2360_v57 = vld [vmem:[#allocation5 + $0x340] ss:$16 sps:$4 sm:$0xff]  }
 0x145   :  { %2438 = vtanh.f32 %v387_v50  ;;  %v2357_v50 = vld [vmem:[#allocation5 + $0x328] ss:$16 sps:$4 sm:$0xff]   ;;  %v380_v52 = vadd.f32 %v2711_v53, %v135_v46  ;;  %v2365_v55 = vld [vmem:[#allocation5 + $0x34c] ss:$16 sps:$4 sm:$0xff]   ;;  %v2368_v39 = vld [vmem:[#allocation5 + $0x364] ss:$16 sps:$4 sm:$0xff]  }
 0x146   :  { %2440 = vtanh.f32 %v389_v59  ;;  %v2371_v59 = vld [vmem:[#allocation5 + $0x36c] ss:$16 sps:$4 sm:$0xff]   ;;  %v2374_v53 = vld [vmem:[#allocation5 + $0x384] ss:$16 sps:$4 sm:$0xff]  }
 0x147   :  { %v388_v56 = vmul.f32 0.5, %v380_v52  ;;  %v2420_v46 = vld [vmem:[#allocation7 + $0x70] sm:$0xff]   ;;  %v2425_v52 = vld [vmem:[#allocation7 + $0xf8] sm:$0xff]  }
 0x149   :  { %2442 = vtanh.f32 %v388_v56  ;;  %v2581_v56 = vmov 0.0  }
 0x14e   :  { %v2437_v58 = vpop.eup %2436 }
 0x14f   :  { %v2439_v60 = vpop.eup %2438  ;;  %v394_v61 = vmul.f32 0.5, %v2437_v58  ;;  %v2363_v58 = vld [vmem:[#allocation5 + $0x348] ss:$16 sps:$4 sm:$0xff]  }
 0x150   :  { %v395_v62 = vmul.f32 0.5, %v2439_v60  ;;  %v2441_v11 = vpop.eup %2440  ;;  %v2366_v60 = vld [vmem:[#allocation5 + $0x360] ss:$16 sps:$4 sm:$0xff]  }
 0x151   :  { %v398_v63 = vadd.f32 0.5, %v394_v61  ;;  %v397_v12 = vmul.f32 0.5, %v2441_v11  ;;  %v2369_v61 = vld [vmem:[#allocation5 + $0x368] ss:$16 sps:$4 sm:$0xff]   ;;  %v2392_v11 = vld [vmem:[#allocation5 + $0x3e4] ss:$16 sps:$4 sm:$0xff]  }
 0x152   :  { %v399_v0 = vadd.f32 0.5, %v395_v62  ;;  %v2377_v62 = vld [vmem:[#allocation5 + $0x38c] ss:$16 sps:$4 sm:$0xff]  }
 0x153   :  { %v402_v4 = vpack.c.bf16 %v398_v63, %v398_v63  ;;  %v401_v17 = vadd.f32 0.5, %v397_v12  ;;  %v2372_v63 = vld [vmem:[#allocation5 + $0x380] ss:$16 sps:$4 sm:$0xff]   ;;  %v2395_v12 = vld [vmem:[#allocation5 + $0x3ec] ss:$16 sps:$4 sm:$0xff]  }
 0x154   :  { %v403_v1 = vpack.c.bf16 %v399_v0, %v399_v0  ;;  %v2375_v0 = vld [vmem:[#allocation5 + $0x388] ss:$16 sps:$4 sm:$0xff]  }
 0x155   :  { %v405_v18 = vpack.c.bf16 %v401_v17, %v401_v17  ;;  %v2397_v17 = vld [vmem:[#allocation7 + $0xc0] sm:$0xff]  }
 0x156   :  { %1228 = vmatprep.mubr.bf16.mxu0 %v403_v1  ;;  %1310 = vmatprep.mubr.bf16.mxu1 %v403_v1  ;;  %v2380_v1 = vld [vmem:[#allocation5 + $0x3a4] ss:$16 sps:$4 sm:$0xff]  }
 0x157   :  { %1229 = vmatmul.mubr.bf16.vlgmr.msra.gmra.mrb[4].mxu0 %v402_v4  ;;  %1311 = vmatmul.mubr.bf16.vlgmr.msra.gmra.mrb[4].mxu1 %v402_v4  ;;  %v2381_v4 = vld [vmem:[#allocation5 + $0x3a8] ss:$16 sps:$4 sm:$0xff]  }
 0x158   :  { %1238 = vmatpush1.bf16.msra.mxu0 %v2300_v2  ;;  %1320 = vmatpush1.bf16.msra.mxu1 %v2303_v3  ;;  %v2383_v2 = vld [vmem:[#allocation5 + $0x3ac] ss:$16 sps:$4 sm:$0xff]   ;;  %v2378_v3 = vld [vmem:[#allocation5 + $0x3a0] ss:$16 sps:$4 sm:$0xff]  }
 0x159   :  { %1239 = vmatprep.subr.bf16.mxu0 %v2308_v5  ;;  %1321 = vmatprep.subr.bf16.mxu1 %v2311_v6  ;;  %v2386_v5 = vld [vmem:[#allocation5 + $0x3c4] ss:$16 sps:$4 sm:$0xff]   ;;  %v2389_v6 = vld [vmem:[#allocation5 + $0x3cc] ss:$16 sps:$4 sm:$0xff]  }
 0x15a   :  { %1269 = vmatprep.mubr.bf16.mxu0 %v405_v18  ;;  %1351 = vmatprep.mubr.bf16.mxu1 %v405_v18  ;;  %v2398_v18 = vld [vmem:[#allocation7] sm:$0xff]  }
 0x15c   :  { %1240 = vmatpush1.bf16.msra.mxu0 %v2306_v7  ;;  %1322 = vmatpush1.bf16.msra.mxu1 %v2309_v8  ;;  %v2443_v7 = vpop.eup %2442  ;;  %v2384_v8 = vld [vmem:[#allocation5 + $0x3c0] ss:$16 sps:$4 sm:$0xff]  }
 0x15d   :  { %1241 = vmatprep.subr.bf16.mxu0 %v2314_v9  ;;  %1323 = vmatprep.subr.bf16.mxu1 %v2317_v10  ;;  %v2387_v9 = vld [vmem:[#allocation5 + $0x3c8] ss:$16 sps:$4 sm:$0xff]   ;;  %v396_v10 = vmul.f32 0.5, %v2443_v7 }
 0x160   :  { %1242 = vmatpush1.bf16.msra.mxu0 %v2312_v13  ;;  %1324 = vmatpush1.bf16.msra.mxu1 %v2315_v14  ;;  %v2390_v13 = vld [vmem:[#allocation5 + $0x3e0] ss:$16 sps:$4 sm:$0xff]   ;;  %v2393_v14 = vld [vmem:[#allocation5 + $0x3e8] ss:$16 sps:$4 sm:$0xff]  }
 0x161   :  { %1243 = vmatprep.subr.bf16.mxu0 %v2320_v15  ;;  %1325 = vmatprep.subr.bf16.mxu1 %v2323_v16  ;;  %v400_v15 = vadd.f32 0.5, %v396_v10  ;;  %v2396_v16 = vld [vmem:[#allocation7 + $0x40] sm:$0xff]  }
 0x164   :  { %1244 = vmatpush1.bf16.msra.mxu0 %v2318_v19  ;;  %1326 = vmatpush1.bf16.msra.mxu1 %v2321_v20  ;;  %v2399_v19 = vld [vmem:[#allocation7 + $0x80] sm:$0xff]   ;;  %v404_v20 = vpack.c.bf16 %v400_v15, %v400_v15 }
 0x165   :  { %1245 = vmatprep.subr.bf16.mxu0 %v2326_v21  ;;  %1327 = vmatprep.subr.bf16.mxu1 %v2329_v22  ;;  %v2400_v21 = vld [vmem:[#allocation7 + $0x48] sm:$0xff]  }
 0x166   :  { %v2401_v22 = vld [vmem:[#allocation7 + $0xc8] sm:$0xff]  }
 0x168   :  { %1246 = vmatpush1.bf16.msra.mxu0 %v2324_v23  ;;  %1328 = vmatpush1.bf16.msra.mxu1 %v2327_v24  ;;  %v2402_v23 = vld [vmem:[#allocation7 + $0x8] sm:$0xff]  }
 0x169   :  { %1247 = vmatprep.subr.bf16.mxu0 %v2332_v25  ;;  %1329 = vmatprep.subr.bf16.mxu1 %v2335_v26  ;;  %v2403_v24 = vld [vmem:[#allocation7 + $0x88] sm:$0xff]   ;;  %v2404_v25 = vld [vmem:[#allocation7 + $0x50] sm:$0xff]  }
 0x16a   :  { %v2405_v26 = vld [vmem:[#allocation7 + $0xd0] sm:$0xff]  }
 0x16c   :  { %1248 = vmatpush1.bf16.msra.mxu0 %v2330_v27  ;;  %1330 = vmatpush1.bf16.msra.mxu1 %v2333_v28  ;;  %v2406_v27 = vld [vmem:[#allocation7 + $0x10] sm:$0xff]  }
 0x16d   :  { %1249 = vmatprep.subr.bf16.mxu0 %v2338_v29  ;;  %1331 = vmatprep.subr.bf16.mxu1 %v2341_v30  ;;  %v2407_v28 = vld [vmem:[#allocation7 + $0x90] sm:$0xff]   ;;  %v2408_v29 = vld [vmem:[#allocation7 + $0x58] sm:$0xff]  }
 0x16e   :  { %v2409_v30 = vld [vmem:[#allocation7 + $0xd8] sm:$0xff]  }
 0x170   :  { %1250 = vmatpush1.bf16.msra.mxu0 %v2336_v31  ;;  %1332 = vmatpush1.bf16.msra.mxu1 %v2339_v32  ;;  %v2410_v31 = vld [vmem:[#allocation7 + $0x18] sm:$0xff]  }
 0x171   :  { %1251 = vmatprep.subr.bf16.mxu0 %v2344_v33  ;;  %1333 = vmatprep.subr.bf16.mxu1 %v2347_v34  ;;  %v2411_v32 = vld [vmem:[#allocation7 + $0x98] sm:$0xff]   ;;  %v2412_v33 = vld [vmem:[#allocation7 + $0x60] sm:$0xff]  }
 0x172   :  { %v2413_v34 = vld [vmem:[#allocation7 + $0xe0] sm:$0xff]  }
 0x174   :  { %1252 = vmatpush1.bf16.msra.mxu0 %v2342_v35  ;;  %1334 = vmatpush1.bf16.msra.mxu1 %v2345_v36  ;;  %v2414_v35 = vld [vmem:[#allocation7 + $0x20] sm:$0xff]  }
 0x175   :  { %1253 = vmatprep.subr.bf16.mxu0 %v2350_v42  ;;  %1335 = vmatprep.subr.bf16.mxu1 %v2353_v43  ;;  %v2415_v36 = vld [vmem:[#allocation7 + $0xa0] sm:$0xff]   ;;  %v2416_v42 = vld [vmem:[#allocation7 + $0x68] sm:$0xff]  }
 0x176   :  { %v2417_v43 = vld [vmem:[#allocation7 + $0xe8] sm:$0xff]  }
 0x178   :  { %1254 = vmatpush1.bf16.msra.mxu0 %v2348_v44  ;;  %1336 = vmatpush1.bf16.msra.mxu1 %v2351_v45  ;;  %v2418_v44 = vld [vmem:[#allocation7 + $0x28] sm:$0xff]  }
 0x179   :  { %1255 = vmatprep.subr.bf16.mxu0 %v2356_v47  ;;  %1337 = vmatprep.subr.bf16.mxu1 %v2359_v48  ;;  %v2419_v45 = vld [vmem:[#allocation7 + $0xa8] sm:$0xff]   ;;  %v2421_v47 = vld [vmem:[#allocation7 + $0xf0] sm:$0xff]  }
 0x17a   :  { %v2422_v48 = vld [vmem:[#allocation7 + $0x30] sm:$0xff]  }
 0x17c   :  { %1256 = vmatpush1.bf16.msra.mxu0 %v2354_v49  ;;  %1338 = vmatpush1.bf16.msra.mxu1 %v2357_v50  ;;  %v2423_v49 = vld [vmem:[#allocation7 + $0xb0] sm:$0xff]   ;;  %v2424_v50 = vld [vmem:[#allocation7 + $0x78] sm:$0xff]  }
 0x17d   :  { %1257 = vmatprep.subr.bf16.mxu0 %v2362_v54  ;;  %1339 = vmatprep.subr.bf16.mxu1 %v2365_v55  ;;  %v2426_v54 = vld [vmem:[#allocation7 + $0x38] sm:$0xff]  }
 0x17e   :  { %v2427_v55 = vld [vmem:[#allocation7 + $0xb8] sm:$0xff]  }
 0x180   :  { %1258 = vmatpush1.bf16.msra.mxu0 %v2360_v57  ;;  %1340 = vmatpush1.bf16.msra.mxu1 %v2363_v58  ;;  %v534_v57 = vld [vmem:[%s2760_s4] sm:$0xf] }
 0x181   :  { %1259 = vmatprep.subr.bf16.mxu0 %v2368_v39  ;;  %1341 = vmatprep.subr.bf16.mxu1 %v2371_v59  ;;  %v539_v58 = vrot.slane %v534_v57, %v126_v38  ;;  %v547_v39 = vrot.slane %v534_v57, %v134_v41  ;;  %v543_v59 = vrot.slane %v534_v57, %v130_v40 }
 0x184   :  { %1260 = vmatpush1.bf16.msra.mxu0 %v2366_v60  ;;  %1342 = vmatpush1.bf16.msra.mxu1 %v2369_v61  ;;  %v551_v60 = vrot.slane %v534_v57, %v138_v51 }
 0x185   :  { %1261 = vmatprep.subr.bf16.mxu0 %v2374_v53  ;;  %1343 = vmatprep.subr.bf16.mxu1 %v2377_v62 }
 0x188   :  { %1262 = vmatpush1.bf16.msra.mxu0 %v2372_v63  ;;  %1344 = vmatpush1.bf16.msra.mxu1 %v2375_v0 }
 0x189   :  { %1263 = vmatprep.subr.bf16.mxu0 %v2380_v1  ;;  %1345 = vmatprep.subr.bf16.mxu1 %v2383_v2 }
 0x18c   :  { %1264 = vmatpush1.bf16.msra.mxu0 %v2378_v3  ;;  %1346 = vmatpush1.bf16.msra.mxu1 %v2381_v4 }
 0x18d   :  { %1265 = vmatprep.subr.bf16.mxu0 %v2386_v5  ;;  %1347 = vmatprep.subr.bf16.mxu1 %v2389_v6 }
 0x190   :  { %1266 = vmatpush1.bf16.msra.mxu0 %v2384_v8  ;;  %1348 = vmatpush1.bf16.msra.mxu1 %v2387_v9 }
 0x191   :  { %1267 = vmatprep.subr.bf16.mxu0 %v2392_v11  ;;  %1349 = vmatprep.subr.bf16.mxu1 %v2395_v12 }
 0x194   :  { %1268 = vmatpush1.bf16.msra.mxu0 %v2390_v13  ;;  %1350 = vmatpush1.bf16.msra.mxu1 %v2393_v14 }
 0x195   :  { %2059 = vmatprep.subr.bf16.mxu0 %v2396_v16  ;;  %2081 = vmatprep.subr.bf16.mxu1 %v2397_v17 }
 0x197   :  { %1270 = vmatmul.mubr.bf16.vlgmr.msra.gmra.mrb[4].mxu0 %v404_v20  ;;  %1352 = vmatmul.mubr.bf16.vlgmr.msra.gmra.mrb[4].mxu1 %v404_v20  ;;  %v2428_v20 = vld [vmem:[#allocation8] sm:$0xff]  }
 0x198   :  { %2060 = vmatpush3.bf16.msra.mxu0 %v2398_v18  ;;  %2082 = vmatpush3.bf16.msra.mxu1 %v2399_v19 }
 0x199   :  { %2061 = vmatprep.subr.bf16.mxu0 %v2400_v21  ;;  %2083 = vmatprep.subr.bf16.mxu1 %v2401_v22 }
 0x19c   :  { %2062 = vmatpush3.bf16.msra.mxu0 %v2402_v23  ;;  %2084 = vmatpush3.bf16.msra.mxu1 %v2403_v24  ;;  %v2429_v24 = vld [vmem:[#allocation8 + $0x8] sm:$0xff]  }
 0x19d   :  { %2063 = vmatprep.subr.bf16.mxu0 %v2404_v25  ;;  %2085 = vmatprep.subr.bf16.mxu1 %v2405_v26  ;;  %v2430_v25 = vld [vmem:[#allocation8 + $0x10] sm:$0xff]   ;;  %v2431_v26 = vld [vmem:[#allocation8 + $0x18] sm:$0xff]  }
 0x1a0   :  { %2064 = vmatpush3.bf16.msra.mxu0 %v2406_v27  ;;  %2086 = vmatpush3.bf16.msra.mxu1 %v2407_v28  ;;  %v2432_v27 = vld [vmem:[#allocation8 + $0x20] sm:$0xff]   ;;  %v2433_v28 = vld [vmem:[#allocation8 + $0x28] sm:$0xff]  }
 0x1a1   :  { %2065 = vmatprep.subr.bf16.mxu0 %v2408_v29  ;;  %2087 = vmatprep.subr.bf16.mxu1 %v2409_v30  ;;  %v2434_v29 = vld [vmem:[#allocation8 + $0x30] sm:$0xff]   ;;  %v2435_v30 = vld [vmem:[#allocation8 + $0x38] sm:$0xff]  }
 0x1a4   :  { %2066 = vmatpush3.bf16.msra.mxu0 %v2410_v31  ;;  %2088 = vmatpush3.bf16.msra.mxu1 %v2411_v32 }
 0x1a5   :  { %2067 = vmatprep.subr.bf16.mxu0 %v2412_v33  ;;  %2089 = vmatprep.subr.bf16.mxu1 %v2413_v34  ;;  %v2017_v33 = vld [vmem:[%s2762_s6] ss:$0 sm:$0xff]  ;;  %s2583_s6 = smov [#allocation10]  }
 0x1a6   :  { %s1846_s24 = sshll.u32 %s2583_s6, 4  ;;  %s1847_s24 = int_to_ptr.vmem [resolvable:$true] %s1846_s24 }
 0x1a7   :  { %s2542_s25 = scalar_lea.vmem %s1847_s24, 128  ;;  %p2547_p5 = scmp.lt.s32.totalorder %s1847_s24, %s1847_s24 }
 0x1a8   :  { %2068 = vmatpush3.bf16.msra.mxu0 %v2414_v35  ;;  %2090 = vmatpush3.bf16.msra.mxu1 %v2415_v36  ;;  %p2543_p4 = scmp.ne.s32.totalorder %s1847_s24, %s2542_s25  ;;  %p2548_p6 = scmp.lt.s32.totalorder %s2542_s25, %s2542_s25 }
 0x1a9   :  { %2069 = vmatprep.subr.bf16.mxu0 %v2416_v42  ;;  %2091 = vmatprep.subr.bf16.mxu1 %v2417_v43 }
 0x1aa   :  { %p2549_p7 = por %p2548_p6, %p2547_p5 }
 0x1ac   :  { %2070 = vmatpush3.bf16.msra.mxu0 %v2418_v44  ;;  %2092 = vmatpush3.bf16.msra.mxu1 %v2419_v45  ;;  %p2550_p8 = pnand %p2549_p7, %p2543_p4 }
 0x1ad   :  { %2071 = vmatprep.subr.bf16.mxu0 %v2420_v46  ;;  %2093 = vmatprep.subr.bf16.mxu1 %v2421_v47 }
 0x1b0   :  { %2072 = vmatpush3.bf16.msra.mxu0 %v2422_v48  ;;  %2094 = vmatpush3.bf16.msra.mxu1 %v2423_v49 }
 0x1b1   :  { %2073 = vmatprep.subr.bf16.mxu0 %v2424_v50  ;;  %2095 = vmatprep.subr.bf16.mxu1 %v2425_v52 }
 0x1b4   :  { %2074 = vmatpush3.bf16.msra.mxu0 %v2426_v54  ;;  %2096 = vmatpush3.bf16.msra.mxu1 %v2427_v55 }
 0x1b5   :  { %2112 = vmatprep.subr.bf16.mxu0 %v2581_v56 }
 0x26a   :  { %v1271_v61 = vpop.f32.mrb[4].mxu0  ;;  %v1353_v53 = vpop.f32.mrb[4].mxu1 }
 0x26b   :  { %v2132_v62 = vadd.f32 %v1271_v61, %v539_v58  ;;  %v2134_v63 = vadd.f32 %v1353_v53, %v547_v39  ;;  %v1273_v0 = vpop.f32.mrb[5].mxu0  ;;  %v1355_v1 = vpop.f32.mrb[5].mxu1 }
 0x26c   :  { %v2133_v2 = vadd.f32 %v1273_v0, %v543_v59  ;;  %v2135_v3 = vadd.f32 %v1355_v1, %v551_v60  ;;  %v1275_v4 = vpop.f32.mrb[6].mxu0  ;;  %v1357_v5 = vpop.f32.mrb[6].mxu1 }
 0x26d   :  { %v1360_v38 = vmul.f32 0.5, %v2132_v62  ;;  %v1362_v6 = vmul.f32 0.5, %v2134_v63  ;;  %v1276_v7 = vpop.f32.mrb[7].mxu0  ;;  %v1358_v41 = vpop.f32.mrb[7].mxu1 }
 0x26e   :  { %v1361_v8 = vmul.f32 0.5, %v2133_v2  ;;  %v1363_v9 = vmul.f32 0.5, %v2135_v3 }
 0x26f   :  { %2444 = vtanh.f32 %v1360_v38 }
 0x270   :  { %2446 = vtanh.f32 %v1362_v6 }
 0x271   :  { %2448 = vtanh.f32 %v1361_v8 }
 0x272   :  { %2450 = vtanh.f32 %v1363_v9 }
 0x279   :  { %v2445_v37 = vpop.eup %2444 }
 0x27a   :  { %v2447_v40 = vpop.eup %2446  ;;  %v1368_v51 = vmul.f32 0.5, %v2445_v37 }
 0x27b   :  { %v2449_v10 = vpop.eup %2448  ;;  %v1370_v11 = vmul.f32 0.5, %v2447_v40 }
 0x27c   :  { %v2451_v12 = vpop.eup %2450  ;;  %v1369_v13 = vmul.f32 0.5, %v2449_v10  ;;  %v1372_v14 = vadd.f32 0.5, %v1368_v51 }
 0x27d   :  { %v1371_v15 = vmul.f32 0.5, %v2451_v12  ;;  %v1374_v16 = vadd.f32 0.5, %v1370_v11 }
 0x27e   :  { %v1373_v17 = vadd.f32 0.5, %v1369_v13  ;;  %v1376_v21 = vpack.c.bf16 %v1372_v14, %v1372_v14 }
 0x27f   :  { %v1375_v18 = vadd.f32 0.5, %v1371_v15  ;;  %v1378_v23 = vpack.c.bf16 %v1374_v16, %v1374_v16 }
 0x280   :  { %v1377_v19 = vpack.c.bf16 %v1373_v17, %v1373_v17 }
 0x281   :  { %v1379_v22 = vpack.c.bf16 %v1375_v18, %v1375_v18 }
 0x282   :  { %1675 = vmatprep.mubr.bf16.mxu0 %v1377_v19 }
 0x283   :  { %1715 = vmatprep.mubr.bf16.mxu1 %v1379_v22  ;;  %1676 = vmatmul.mubr.bf16.vlgmr.msra.gmra.mrb[8].mxu0 %v1376_v21 }
 0x284   :  { %1716 = vmatmul.mubr.bf16.vlgmr.msra.gmra.mrb[8].mxu1 %v1378_v23  ;;  %2113 = vmatpush3.bf16.msra.mxu0 %v2428_v20 }
 0x285   :  { %2114 = vmatprep.subr.bf16.mxu0 %v2581_v56  ;;  %2128 = vmatprep.mubr.msk.bf16.mxu0 %vm2582_vm0, %v2581_v56 }
 0x288   :  { %2115 = vmatpush3.bf16.msra.mxu0 %v2429_v24 }
 0x289   :  { %2116 = vmatprep.subr.bf16.mxu0 %v2581_v56 }
 0x28c   :  { %2117 = vmatpush3.bf16.msra.mxu0 %v2430_v25 }
 0x28d   :  { %2118 = vmatprep.subr.bf16.mxu0 %v2581_v56 }
 0x290   :  { %2119 = vmatpush3.bf16.msra.mxu0 %v2431_v26 }
 0x291   :  { %2120 = vmatprep.subr.bf16.mxu0 %v2581_v56 }
 0x294   :  { %2121 = vmatpush3.bf16.msra.mxu0 %v2432_v27 }
 0x295   :  { %2122 = vmatprep.subr.bf16.mxu0 %v2581_v56 }
 0x298   :  { %2123 = vmatpush3.bf16.msra.mxu0 %v2433_v28 }
 0x299   :  { %2124 = vmatprep.subr.bf16.mxu0 %v2581_v56 }
 0x29c   :  { %2125 = vmatpush3.bf16.msra.mxu0 %v2434_v29 }
 0x29d   :  { %2126 = vmatprep.subr.bf16.mxu0 %v2581_v56  ;;  %v2050_v56 = vld [vmem:[%s2764_s8] ss:$0 sm:$0xff] }
 0x2a0   :  { %2127 = vmatpush3.bf16.msra.mxu0 %v2435_v30 }
 0x356   :  { %v2075_v31 = vpop.f32.mrb[8].mxu0 }
 0x357   :  { %v2097_v32 = vpop.f32.mrb[8].mxu1  ;;  %v2076_v34 = vpop.f32.mrb[9].mxu0 }
 0x358   :  { %v2077_v35 = vadd.f32 %v2076_v34, %v2075_v31  ;;  %v2098_v36 = vpop.f32.mrb[9].mxu1  ;;  %v2078_v42 = vpop.f32.mrb[10].mxu0 }
 0x359   :  { %v2099_v43 = vadd.f32 %v2098_v36, %v2097_v32  ;;  %v2100_v44 = vpop.f32.mrb[10].mxu1  ;;  %v2079_v45 = vpop.f32.mrb[11].mxu0 }
 0x35a   :  { %v1678_v46 = vadd.f32 %v2077_v35, %v2017_v33  ;;  %v2101_v47 = vpop.f32.mrb[11].mxu1 }
 0x35c   :  { %v1718_v48 = vadd.f32 %v2099_v43, %v1678_v46 }
 0x35e   :  { %v1723_v49 = vmul.f32 0.5, %v1718_v48 }
 0x360   :  { %2452 = vtanh.f32 %v1723_v49 }
 0x36a   :  { %v2453_v50 = vpop.eup %2452 }
 0x36b   :  { %v1725_v52 = vmul.f32 0.5, %v2453_v50 }
 0x36d   :  { %v1726_v54 = vadd.f32 0.5, %v1725_v52 }
 0x36f   :  { %v1727_v55 = vpack.c.bf16 %v1726_v54, %v1726_v54 }
 0x371   :  { %2129 = vmatmul.mubr.bf16.vlgmr.msra.gmra.mrb[12].mxu0 %v1727_v55 }
 0x444   :  { %v1833_v57 = vpop.f32.mrb[12].mxu0 }
 0x445   :  { %v1834_v58 = vadd.f32 %v2050_v56, %v1833_v57  ;;  %v2130_v39 = vpop.f32.mrb[13].mxu0 }
 0x446   :  { %v1836_v59 = vpop.f32.mrb[14].mxu0 }
 0x447   :  { %1839 = vst [vmem:[#allocation10] sm:$0xff] %v1834_v58  ;;  %v2131_v60 = vpop.f32.mrb[15].mxu0 }
 0x448   :  { %2553 = shalt.err (!%p2550_p8)
}
 0x449   :  { %s2554_s8 = scalar_lea.hbm %s2765_s9, 128 }
 0x44a   :  { %p2555_p9 = scmp.ne.s32.totalorder %s2765_s9, %s2554_s8  ;;  %p2558_p10 = scmp.lt.u32.totalorder %s2554_s8, %s2765_s9 }
 0x44c   :  { %p2560_p11 = pnand %p2558_p10, %p2555_p9 }
 0x44e   :  { %2563 = shalt.err (!%p2560_p11)
}
 0x44f   :  { %1849 = dma.vmem_to_hbm [thread:$0]  %s1847_s24, 128, %s2765_s9, [#allocation4]  }
 0x450   :  { %2570 = dma.done.wait [#allocation4], 128  }
 0x451   :  { %2571 = vsyncadd [#allocation4], 4294967168 }
 0x452   :  { %1853 = vsyncpa [#allocation3], 1 }
 0x453   :  { %1854 = vsyncpa [#allocation6], 1 }
 0x454   :  { %1855 = vsyncpa [#allocation9], 1 }
 0x455   :  { %1856 = vsyncpa [#allocation4], 1 }

</bundles_post_ra>
